<compile_context>
chip_gen: v7x
topology: tpu7x:2x2x1
jax: 0.10.0
libtpu: 0.0.40
codegen_flags: <defaults>
</compile_context>

<pallas_src>
import math

import jax
import jax.numpy as jnp
from jax.experimental import pallas as pl
from jax.experimental.pallas import tpu as pltpu

DICE_COEFF = 0.02
SMOOTH = 1.0

_MAX_TD = 65536          # cap on lane-tile width
_MIN_PIPE_TD = 4096      # don't shrink tiles below this while chasing >=3 steps


def _pow2_floor_128(x):
    """Largest 128 * 2**k that is <= x (requires x >= 128)."""
    return 128 << int(math.floor(math.log2(x / 128)))


def _choose_sub_rows(B, D, max_s=64):
    """Smallest S dividing D such that B*S is a multiple of 8 (full sublanes)."""
    for s in range(1, max_s + 1):
        if D % s == 0 and (B * s) % 8 == 0:
            return s
    return 1


def _tpu_config():
    """Returns (tensorcores to use, per-input per-step VMEM byte target)."""
    kind = ""
    try:
        kind = jax.devices()[0].device_kind.lower()
    except Exception:
        pass
    core_parallel = getattr(pltpu, "CORE_PARALLEL", None)
    if ("v7" in kind or "7x" in kind) and core_parallel is not None:
        return 2, 4 << 20        # v7x: 2 TCs, 3.2 TB/s HBM -> bigger steps
    return 1, 2 << 20            # v5e / v6e: single TensorCore


def _fold_lanes(x, aw):
    """(R, w) -> (R, aw) by pairwise halving; w == aw * 2**k.

    All slices are 128-lane aligned (w is a power-of-two multiple of aw), so
    this is pure VALU work: no XLU cross-lane reduce, no relayout.
    """
    w = x.shape[1]
    while w > aw:
        h = w // 2
        x = x[:, :h] + x[:, h:]
        w = h
    return x


def _de_partials_kernel(logits_ref, targets_ref,
                        bce_out, inter_out, s1_out, s2_out):
    # Grid = (core, lane_tile); lane_tile is the "arbitrary" reduction axis.
    k = pl.program_id(1)
    aw = bce_out.shape[-1]

    @pl.when(k == 0)
    def _init():
        bce_out[...] = jnp.zeros_like(bce_out)
        inter_out[...] = jnp.zeros_like(inter_out)
        s1_out[...] = jnp.zeros_like(s1_out)
        s2_out[...] = jnp.zeros_like(s2_out)

    # Single f32 cast per tile (inputs may arrive as bf16 / f32 native dtype).
    p = logits_ref[...].astype(jnp.float32)
    t = targets_ref[...].astype(jnp.float32)

    # torch.nn.BCELoss semantics (log clamped at -100); the elementwise BCE is
    #   -(t*log p + (1-t)*log(1-p)) = -(log(1-p) + t*(log p - log(1-p)))
    # The negation is deferred to the scalar epilogue.
    log_p = jnp.maximum(jnp.log(p), -100.0)
    log_1mp = jnp.maximum(jnp.log(1.0 - p), -100.0)
    pos_bce = log_1mp + t * (log_p - log_1mp)

    # Lane-dense (R, aw) partials accumulated into resident output blocks.
    bce_out[0, :, :] += _fold_lanes(pos_bce, aw)
    inter_out[0, :, :] += _fold_lanes(p * t, aw)
    s1_out[0, :, :] += _fold_lanes(p, aw)
    s2_out[0, :, :] += _fold_lanes(t, aw)


def de_loss(logits, targets, dice_coeff=DICE_COEFF):
    """logits/targets: NCHW probability maps (any float dtype). Scalar f32 loss."""
    B = logits.shape[0]
    D = math.prod(logits.shape[1:])

    # Sublane packing: view each sample as S sub-rows so B*S is a multiple of 8.
    S = _choose_sub_rows(B, D)
    R = B * S
    Wc = D // S

    itemsize = max(jnp.dtype(logits.dtype).itemsize,
                   jnp.dtype(targets.dtype).itemsize)
    ncores, per_step_bytes = _tpu_config()

    # ---- tile-width selection -------------------------------------------
    if Wc < 128:
        td, aw = Wc, Wc            # single full-width tile (tiny inputs)
        ncores = 1
    else:
        budget_lanes = max(128, per_step_bytes // (R * itemsize))
        td = _pow2_floor_128(min(budget_lanes, _MAX_TD, Wc))
        # Keep >=3 steps per core when the data allows, so DMA/compute overlap.
        while td > _MIN_PIPE_TD and (Wc // (ncores * td)) < 3:
            td //= 2
        aw = 128

    nk_full = Wc // td
    if nk_full < ncores:
        ncores = 1
    nk_pc = nk_full // ncores              # lane tiles per core
    W_kernel = nk_pc * ncores * td         # columns covered by the kernel
    W_tail = Wc - W_kernel                 # ragged tail -> JAX epilogue

    m1 = logits.reshape(R, Wc)             # pure reshape, no copy
    m2 = targets.reshape(R, Wc)

    n_k = R * W_kernel
    cost = pl.CostEstimate(
        flops=12 * n_k,
        transcendentals=2 * n_k,                     # 2 logs per element (EUP)
        bytes_accessed=2 * n_k * itemsize + 4 * ncores * R * aw * 4,
    )

    footprint = 2 * 2 * R * td * itemsize + 4 * 2 * R * aw * 4
    vmem_limit = int(min(48 << 20, max(16 << 20, footprint + (6 << 20))))

    if ncores == 2:
        dims = (pltpu.CORE_PARALLEL, getattr(pltpu, "ARBITRARY", "arbitrary"))
    else:
        dims = ("arbitrary", "arbitrary")

    in_spec = pl.BlockSpec((R, td), lambda c, k: (0, c * nk_pc + k))
    out_specs = [pl.BlockSpec((1, R, aw), lambda c, k: (c, 0, 0))
                 for _ in range(4)]

    grid_spec = pltpu.PrefetchScalarGridSpec(
        num_scalar_prefetch=0,
        grid=(ncores, nk_pc),
        in_specs=[in_spec, in_spec],
        out_specs=out_specs,
    )

    bce_p, inter_p, s1_p, s2_p = pl.pallas_call(
        _de_partials_kernel,
        out_shape=tuple(jax.ShapeDtypeStruct((ncores, R, aw), jnp.float32)
                        for _ in range(4)),
        grid_spec=grid_spec,
        compiler_params=pltpu.CompilerParams(
            dimension_semantics=dims, vmem_limit_bytes=vmem_limit),
        cost_estimate=cost,
    )(m1, m2)

    # ---- tiny O(B) epilogue (plus the <ncores*td-column ragged tail) ------
    bce_pos = jnp.sum(bce_p)
    inter_rows = jnp.sum(inter_p, axis=(0, 2))
    s1_rows = jnp.sum(s1_p, axis=(0, 2))
    s2_rows = jnp.sum(s2_p, axis=(0, 2))

    if W_tail > 0:
        pt = m1[:, W_kernel:].astype(jnp.float32)
        tt = m2[:, W_kernel:].astype(jnp.float32)
        lp = jnp.maximum(jnp.log(pt), -100.0)
        l1 = jnp.maximum(jnp.log(1.0 - pt), -100.0)
        bce_pos = bce_pos + jnp.sum(l1 + tt * (lp - l1))
        inter_rows = inter_rows + jnp.sum(pt * tt, axis=1)
        s1_rows = s1_rows + jnp.sum(pt, axis=1)
        s2_rows = s2_rows + jnp.sum(tt, axis=1)

    bce = -bce_pos / float(B * D)
    inter_b = inter_rows.reshape(B, S).sum(axis=1)
    s1_b = s1_rows.reshape(B, S).sum(axis=1)
    s2_b = s2_rows.reshape(B, S).sum(axis=1)
    dice = 2.0 * (inter_b + SMOOTH) / (s1_b + s2_b + SMOOTH)
    dice_loss = 1.0 - jnp.sum(dice) / B
    return (dice_loss * dice_coeff + bce).astype(jnp.float32)


def _de_loss_ref(logits, targets, dice_coeff=DICE_COEFF):
    # Pure-JAX reference matching the PyTorch DE_loss forward.
    p = logits.reshape(logits.shape[0], -1).astype(jnp.float32)
    t = targets.reshape(targets.shape[0], -1).astype(jnp.float32)
    bce = jnp.mean(-(t * jnp.maximum(jnp.log(p), -100.0)
                     + (1.0 - t) * jnp.maximum(jnp.log(1.0 - p), -100.0)))
    inter = jnp.sum(p * t, axis=1)
    dice = 2.0 * (inter + SMOOTH) / (jnp.sum(p, axis=1) + jnp.sum(t, axis=1) + SMOOTH)
    dice_loss = 1.0 - jnp.sum(dice) / p.shape[0]
    return dice_loss * dice_coeff + bce


if __name__ == "__main__":
    key = jax.random.PRNGKey(0)
    k1, k2 = jax.random.split(key)

    B, C, H, W = 2, 4, 16, 16
    # Predicted probability map (in (0,1)) and GT probability map (0/1 floats).
    logits = jax.nn.sigmoid(jax.random.normal(k1, (B, C, H, W), dtype=jnp.float32))
    targets = (jax.random.uniform(k2, (B, C, H, W)) > 0.5).astype(jnp.float32)

    loss = jax.jit(de_loss)(logits, targets)
    jax.block_until_ready(loss)

    ref = _de_loss_ref(logits, targets)
    assert jnp.allclose(loss, ref, rtol=1e-5, atol=1e-5), (loss, ref)

    print("KERNEL_OK")
</pallas_src>

<mosaic_0001>
module attributes {stable_mosaic.version = 11 : i64} {
  func.func @_de_partials_kernel(%arg0: i32, %arg1: i32, %arg2: memref<8x256xf32, #tpu.memory_space<vmem>>, %arg3: memref<8x256xf32, #tpu.memory_space<vmem>>, %arg4: memref<1x8x128xf32, #tpu.memory_space<vmem>>, %arg5: memref<1x8x128xf32, #tpu.memory_space<vmem>>, %arg6: memref<1x8x128xf32, #tpu.memory_space<vmem>>, %arg7: memref<1x8x128xf32, #tpu.memory_space<vmem>>) attributes {dimension_semantics = [#tpu.dimension_semantics<arbitrary>, #tpu.dimension_semantics<arbitrary>], iteration_bounds = array<i64: 1, 1>, scalar_prefetch = 0 : i64, scratch_operands = 0 : i64, tpu.core_type = #tpu.core_type<tc>, window_params = [{transform_indices = @transform_0, window_bounds = array<i64: 8, 256>}, {transform_indices = @transform_1, window_bounds = array<i64: 8, 256>}, {transform_indices = @transform_2, window_bounds = array<i64: 1, 8, 128>}, {transform_indices = @transform_3, window_bounds = array<i64: 1, 8, 128>}, {transform_indices = @transform_4, window_bounds = array<i64: 1, 8, 128>}, {transform_indices = @transform_5, window_bounds = array<i64: 1, 8, 128>}]} {
    %c0_i32 = arith.constant 0 : i32
    %0 = arith.cmpi eq, %arg1, %c0_i32 : i32
    %1 = arith.extui %0 : i1 to i32
    %c0_i32_0 = arith.constant 0 : i32
    %2 = arith.cmpi ne, %1, %c0_i32_0 : i32
    scf.if %2 {
      %cst_30 = arith.constant 0.000000e+00 : f32
      %53 = vector.broadcast %cst_30 : f32 to vector<1x8x128xf32>
      %c0_31 = arith.constant 0 : index
      %c0_32 = arith.constant 0 : index
      %c0_33 = arith.constant 0 : index
      %54 = vector.load %arg4[%c0_31, %c0_32, %c0_33] : memref<1x8x128xf32, #tpu.memory_space<vmem>>, vector<1x8x128xf32>
      tpu.vector_store %arg4[%c0_31, %c0_32, %c0_33], %53 {strides = array<i32>} : memref<1x8x128xf32, #tpu.memory_space<vmem>>, vector<1x8x128xf32>,
      %cst_34 = arith.constant 0.000000e+00 : f32
      %55 = vector.broadcast %cst_34 : f32 to vector<1x8x128xf32>
      %c0_35 = arith.constant 0 : index
      %c0_36 = arith.constant 0 : index
      %c0_37 = arith.constant 0 : index
      %56 = vector.load %arg5[%c0_35, %c0_36, %c0_37] : memref<1x8x128xf32, #tpu.memory_space<vmem>>, vector<1x8x128xf32>
      tpu.vector_store %arg5[%c0_35, %c0_36, %c0_37], %55 {strides = array<i32>} : memref<1x8x128xf32, #tpu.memory_space<vmem>>, vector<1x8x128xf32>,
      %cst_38 = arith.constant 0.000000e+00 : f32
      %57 = vector.broadcast %cst_38 : f32 to vector<1x8x128xf32>
      %c0_39 = arith.constant 0 : index
      %c0_40 = arith.constant 0 : index
      %c0_41 = arith.constant 0 : index
      %58 = vector.load %arg6[%c0_39, %c0_40, %c0_41] : memref<1x8x128xf32, #tpu.memory_space<vmem>>, vector<1x8x128xf32>
      tpu.vector_store %arg6[%c0_39, %c0_40, %c0_41], %57 {strides = array<i32>} : memref<1x8x128xf32, #tpu.memory_space<vmem>>, vector<1x8x128xf32>,
      %cst_42 = arith.constant 0.000000e+00 : f32
      %59 = vector.broadcast %cst_42 : f32 to vector<1x8x128xf32>
      %c0_43 = arith.constant 0 : index
      %c0_44 = arith.constant 0 : index
      %c0_45 = arith.constant 0 : index
      %60 = vector.load %arg7[%c0_43, %c0_44, %c0_45] : memref<1x8x128xf32, #tpu.memory_space<vmem>>, vector<1x8x128xf32>
      tpu.vector_store %arg7[%c0_43, %c0_44, %c0_45], %59 {strides = array<i32>} : memref<1x8x128xf32, #tpu.memory_space<vmem>>, vector<1x8x128xf32>,
    } else {
    }
    %c0 = arith.constant 0 : index
    %c0_1 = arith.constant 0 : index
    %3 = vector.load %arg2[%c0, %c0_1] : memref<8x256xf32, #tpu.memory_space<vmem>>, vector<8x256xf32>
    %c0_2 = arith.constant 0 : index
    %c0_3 = arith.constant 0 : index
    %4 = vector.load %arg3[%c0_2, %c0_3] : memref<8x256xf32, #tpu.memory_space<vmem>>, vector<8x256xf32>
    %5 = math.log %3 : vector<8x256xf32>
    %cst = arith.constant -1.000000e+02 : f32
    %6 = vector.broadcast %cst : f32 to vector<8x256xf32>
    %7 = arith.maximumf %5, %6 : vector<8x256xf32>
    %cst_4 = arith.constant 1.000000e+00 : f32
    %8 = vector.broadcast %cst_4 : f32 to vector<8x256xf32>
    %9 = arith.subf %8, %3 : vector<8x256xf32>
    %10 = math.log %9 : vector<8x256xf32>
    %cst_5 = arith.constant -1.000000e+02 : f32
    %11 = vector.broadcast %cst_5 : f32 to vector<8x256xf32>
    %12 = arith.maximumf %10, %11 : vector<8x256xf32>
    %13 = arith.subf %7, %12 : vector<8x256xf32>
    %14 = arith.mulf %4, %13 : vector<8x256xf32>
    %15 = arith.addf %12, %14 : vector<8x256xf32>
    %c0_6 = arith.constant 0 : index
    %c0_7 = arith.constant 0 : index
    %c0_8 = arith.constant 0 : index
    %16 = vector.load %arg4[%c0_6, %c0_7, %c0_8] : memref<1x8x128xf32, #tpu.memory_space<vmem>>, vector<1x8x128xf32>
    %17 = vector.shape_cast %16 : vector<1x8x128xf32> to vector<8x128xf32>
    %18 = vector.extract_strided_slice %15 {offsets = [0, 0], sizes = [8, 128], strides = [1, 1]} : vector<8x256xf32> to vector<8x128xf32>
    %19 = vector.extract_strided_slice %15 {offsets = [0, 128], sizes = [8, 128], strides = [1, 1]} : vector<8x256xf32> to vector<8x128xf32>
    %20 = arith.addf %18, %19 : vector<8x128xf32>
    %21 = arith.addf %17, %20 : vector<8x128xf32>
    %c0_9 = arith.constant 0 : index
    %c0_10 = arith.constant 0 : index
    %c0_11 = arith.constant 0 : index
    %22 = vector.load %arg4[%c0_9, %c0_10, %c0_11] : memref<1x8x128xf32, #tpu.memory_space<vmem>>, vector<1x8x128xf32>
    %23 = vector.shape_cast %22 : vector<1x8x128xf32> to vector<8x128xf32>
    %24 = vector.shape_cast %21 : vector<8x128xf32> to vector<1x8x128xf32>
    tpu.vector_store %arg4[%c0_9, %c0_10, %c0_11], %24 {strides = array<i32>} : memref<1x8x128xf32, #tpu.memory_space<vmem>>, vector<1x8x128xf32>,
    %c0_12 = arith.constant 0 : index
    %c0_13 = arith.constant 0 : index
    %c0_14 = arith.constant 0 : index
    %25 = vector.load %arg5[%c0_12, %c0_13, %c0_14] : memref<1x8x128xf32, #tpu.memory_space<vmem>>, vector<1x8x128xf32>
    %26 = vector.shape_cast %25 : vector<1x8x128xf32> to vector<8x128xf32>
    %27 = arith.mulf %3, %4 : vector<8x256xf32>
    %28 = vector.extract_strided_slice %27 {offsets = [0, 0], sizes = [8, 128], strides = [1, 1]} : vector<8x256xf32> to vector<8x128xf32>
    %29 = vector.extract_strided_slice %27 {offsets = [0, 128], sizes = [8, 128], strides = [1, 1]} : vector<8x256xf32> to vector<8x128xf32>
    %30 = arith.addf %28, %29 : vector<8x128xf32>
    %31 = arith.addf %26, %30 : vector<8x128xf32>
    %c0_15 = arith.constant 0 : index
    %c0_16 = arith.constant 0 : index
    %c0_17 = arith.constant 0 : index
    %32 = vector.load %arg5[%c0_15, %c0_16, %c0_17] : memref<1x8x128xf32, #tpu.memory_space<vmem>>, vector<1x8x128xf32>
    %33 = vector.shape_cast %32 : vector<1x8x128xf32> to vector<8x128xf32>
    %34 = vector.shape_cast %31 : vector<8x128xf32> to vector<1x8x128xf32>
    tpu.vector_store %arg5[%c0_15, %c0_16, %c0_17], %34 {strides = array<i32>} : memref<1x8x128xf32, #tpu.memory_space<vmem>>, vector<1x8x128xf32>,
    %c0_18 = arith.constant 0 : index
    %c0_19 = arith.constant 0 : index
    %c0_20 = arith.constant 0 : index
    %35 = vector.load %arg6[%c0_18, %c0_19, %c0_20] : memref<1x8x128xf32, #tpu.memory_space<vmem>>, vector<1x8x128xf32>
    %36 = vector.shape_cast %35 : vector<1x8x128xf32> to vector<8x128xf32>
    %37 = vector.extract_strided_slice %3 {offsets = [0, 0], sizes = [8, 128], strides = [1, 1]} : vector<8x256xf32> to vector<8x128xf32>
    %38 = vector.extract_strided_slice %3 {offsets = [0, 128], sizes = [8, 128], strides = [1, 1]} : vector<8x256xf32> to vector<8x128xf32>
    %39 = arith.addf %37, %38 : vector<8x128xf32>
    %40 = arith.addf %36, %39 : vector<8x128xf32>
    %c0_21 = arith.constant 0 : index
    %c0_22 = arith.constant 0 : index
    %c0_23 = arith.constant 0 : index
    %41 = vector.load %arg6[%c0_21, %c0_22, %c0_23] : memref<1x8x128xf32, #tpu.memory_space<vmem>>, vector<1x8x128xf32>
    %42 = vector.shape_cast %41 : vector<1x8x128xf32> to vector<8x128xf32>
    %43 = vector.shape_cast %40 : vector<8x128xf32> to vector<1x8x128xf32>
    tpu.vector_store %arg6[%c0_21, %c0_22, %c0_23], %43 {strides = array<i32>} : memref<1x8x128xf32, #tpu.memory_space<vmem>>, vector<1x8x128xf32>,
    %c0_24 = arith.constant 0 : index
    %c0_25 = arith.constant 0 : index
    %c0_26 = arith.constant 0 : index
    %44 = vector.load %arg7[%c0_24, %c0_25, %c0_26] : memref<1x8x128xf32, #tpu.memory_space<vmem>>, vector<1x8x128xf32>
    %45 = vector.shape_cast %44 : vector<1x8x128xf32> to vector<8x128xf32>
    %46 = vector.extract_strided_slice %4 {offsets = [0, 0], sizes = [8, 128], strides = [1, 1]} : vector<8x256xf32> to vector<8x128xf32>
    %47 = vector.extract_strided_slice %4 {offsets = [0, 128], sizes = [8, 128], strides = [1, 1]} : vector<8x256xf32> to vector<8x128xf32>
    %48 = arith.addf %46, %47 : vector<8x128xf32>
    %49 = arith.addf %45, %48 : vector<8x128xf32>
    %c0_27 = arith.constant 0 : index
    %c0_28 = arith.constant 0 : index
    %c0_29 = arith.constant 0 : index
    %50 = vector.load %arg7[%c0_27, %c0_28, %c0_29] : memref<1x8x128xf32, #tpu.memory_space<vmem>>, vector<1x8x128xf32>
    %51 = vector.shape_cast %50 : vector<1x8x128xf32> to vector<8x128xf32>
    %52 = vector.shape_cast %49 : vector<8x128xf32> to vector<1x8x128xf32>
    tpu.vector_store %arg7[%c0_27, %c0_28, %c0_29], %52 {strides = array<i32>} : memref<1x8x128xf32, #tpu.memory_space<vmem>>, vector<1x8x128xf32>,
    return
  }
  func.func @transform_0(%arg0: i32, %arg1: i32) -> (i32, i32) {
    %c1_i32 = arith.constant 1 : i32
    %0 = arith.muli %arg0, %c1_i32 : i32
    %1 = arith.addi %0, %arg1 : i32
    %c0_i32 = arith.constant 0 : i32
    %c0_i32_0 = arith.constant 0 : i32
    return %c0_i32, %1 : i32, i32
  }
  func.func @transform_1(%arg0: i32, %arg1: i32) -> (i32, i32) {
    %c1_i32 = arith.constant 1 : i32
    %0 = arith.muli %arg0, %c1_i32 : i32
    %1 = arith.addi %0, %arg1 : i32
    %c0_i32 = arith.constant 0 : i32
    %c0_i32_0 = arith.constant 0 : i32
    return %c0_i32, %1 : i32, i32
  }
  func.func @transform_2(%arg0: i32, %arg1: i32) -> (i32, i32, i32) {
    %c0_i32 = arith.constant 0 : i32
    %c0_i32_0 = arith.constant 0 : i32
    %c0_i32_1 = arith.constant 0 : i32
    return %arg0, %c0_i32, %c0_i32_0 : i32, i32, i32
  }
  func.func @transform_3(%arg0: i32, %arg1: i32) -> (i32, i32, i32) {
    %c0_i32 = arith.constant 0 : i32
    %c0_i32_0 = arith.constant 0 : i32
    %c0_i32_1 = arith.constant 0 : i32
    return %arg0, %c0_i32, %c0_i32_0 : i32, i32, i32
  }
  func.func @transform_4(%arg0: i32, %arg1: i32) -> (i32, i32, i32) {
    %c0_i32 = arith.constant 0 : i32
    %c0_i32_0 = arith.constant 0 : i32
    %c0_i32_1 = arith.constant 0 : i32
    return %arg0, %c0_i32, %c0_i32_0 : i32, i32, i32
  }
  func.func @transform_5(%arg0: i32, %arg1: i32) -> (i32, i32, i32) {
    %c0_i32 = arith.constant 0 : i32
    %c0_i32_0 = arith.constant 0 : i32
    %c0_i32_1 = arith.constant 0 : i32
    return %arg0, %c0_i32, %c0_i32_0 : i32, i32, i32
  }
}

</mosaic_0001>

<bundles_post_ra>
// kernel: de_loss.1
= control target key start
LH: loop header
LB: loop body
LE: loop exit
PB: predicated region body
PF: predicated region fallthrough
CT: control target
= control target key end

     0   :  { %s200_s0 = inlined_call_operand.vmem [shape: f32[8,256], index: 0, kind: input, shape index: {}]   ;;  %s201_s1 = inlined_call_operand.vmem [shape: f32[8,256], index: 1, kind: input, shape index: {}]   ;;  %s202_s4 = inlined_call_operand.vmem [shape: f32[1,8,128], index: 4, kind: output, shape index: {2}]   ;;  %s203_s5 = inlined_call_operand.vmem [shape: f32[1,8,128], index: 5, kind: output, shape index: {3}]   ;;  %s204_s3 = inlined_call_operand.vmem [shape: f32[1,8,128], index: 3, kind: output, shape index: {1}]   ;;  %s205_s2 = inlined_call_operand.vmem [shape: f32[1,8,128], index: 2, kind: output, shape index: {0}]  }
   0x1   :  { %v67_v0 = vld [vmem:[%s200_s0] sm:$0xff]  ;;  %v68_v1 = vld [vmem:[%s200_s0 + $0x8] sm:$0xff] }
   0x2   :  { %v69_v2 = vld [vmem:[%s201_s1] sm:$0xff]  ;;  %v70_v3 = vld [vmem:[%s201_s1 + $0x8] sm:$0xff]  ;;  %138 = vlog2.f32 %v67_v0  ;;  %v77_v4 = vsub.f32 1.0, %v67_v0  ;;  %v78_v5 = vsub.f32 1.0, %v68_v1  ;;  %v102_v8 = vadd.f32 %v68_v1, %v67_v0 }
   0x3   :  { %v96_v6 = vmul.f32 %v69_v2, %v67_v0  ;;  %140 = vlog2.f32 %v68_v1  ;;  %v97_v7 = vmul.f32 %v70_v3, %v68_v1  ;;  %v106_v9 = vadd.f32 %v70_v3, %v69_v2 }
   0x4   :  { %142 = vlog2.f32 %v77_v4  ;;  %104 = vst [vmem:[%s202_s4] sm:$0xff] %v102_v8 }
   0x5   :  { %144 = vlog2.f32 %v78_v5  ;;  %v98_v10 = vadd.f32 %v97_v7, %v96_v6  ;;  %108 = vst [vmem:[%s203_s5] sm:$0xff] %v106_v9 }
   0x7   :  { %100 = vst [vmem:[%s204_s3] sm:$0xff] %v98_v10 }
   0xc   :  { %v139_v11 = vpop.eup %138 }
   0xd   :  { %v141_v12 = vpop.eup %140  ;;  %v72_v13 = vmul.f32 0.6931472, %v139_v11 }
   0xe   :  { %v143_v14 = vpop.eup %142  ;;  %v74_v15 = vmul.f32 0.6931472, %v141_v12 }
   0xf   :  { %v145_v16 = vpop.eup %144  ;;  %v75_v17 = vmax.f32 %v72_v13, -100.0  ;;  %v80_v18 = vmul.f32 0.6931472, %v143_v14 }
  0x10   :  { %v76_v19 = vmax.f32 %v74_v15, -100.0  ;;  %v82_v20 = vmul.f32 0.6931472, %v145_v16 }
  0x11   :  { %v83_v21 = vmax.f32 %v80_v18, -100.0 }
  0x12   :  { %v84_v22 = vmax.f32 %v82_v20, -100.0 }
  0x13   :  { %v85_v23 = vsub.f32 %v75_v17, %v83_v21 }
  0x14   :  { %v86_v24 = vsub.f32 %v76_v19, %v84_v22 }
  0x15   :  { %v87_v25 = vmul.f32 %v85_v23, %v69_v2 }
  0x16   :  { %v88_v26 = vmul.f32 %v86_v24, %v70_v3 }
  0x17   :  { %v89_v27 = vadd.f32 %v87_v25, %v83_v21 }
  0x18   :  { %v90_v28 = vadd.f32 %v88_v26, %v84_v22 }
  0x1a   :  { %v92_v29 = vadd.f32 %v90_v28, %v89_v27 }
  0x1c   :  { %94 = vst [vmem:[%s205_s2] sm:$0xff] %v92_v29 }

</bundles_post_ra>
